<compile_context>
chip_gen: v6e
topology: v6e:2x2x1
jax: 0.10.0
libtpu: 0.0.40
codegen_flags: <defaults>
</compile_context>

<pallas_src>
import functools

import jax
import jax.numpy as jnp
from jax import lax
from jax.experimental import pallas as pl
from jax.experimental.pallas import tpu as pltpu

_LANE = 128
_SUBLANE = 8


def _dice_kernel(p_ref, t_ref, loss_ref, num_acc, den_acc, *, smooth, p_exp):
    k = pl.program_id(1)

    @pl.when(k == 0)
    def _():
        num_acc[...] = jnp.zeros_like(num_acc)
        den_acc[...] = jnp.zeros_like(den_acc)

    pred = p_ref[...].astype(jnp.float32)   # (1, ts, 128)
    targ = t_ref[...].astype(jnp.float32)

    # predict**p + target**p  -- keep the hot loop on the VPU (no exp/log path
    # for the common integer exponents; p == 2 is a single fused mul-add chain).
    if p_exp == 2:
        pow_sum = pred * pred + targ * targ
    elif float(p_exp).is_integer():
        pe = int(p_exp)
        pow_sum = lax.integer_pow(pred, pe) + lax.integer_pow(targ, pe)
    else:
        # general (possibly non-integer) exponent: matches torch.pow semantics
        pow_sum = pred ** p_exp + targ ** p_exp

    # Lane-parallel partial sums: only the sublane axis is reduced each step;
    # the 128-lane accumulator is combined once in the epilogue.
    num_acc[...] += jnp.sum(pred * targ, axis=1, keepdims=True)   # (1, 1, 128)
    den_acc[...] += jnp.sum(pow_sum, axis=1, keepdims=True)

    @pl.when(k == pl.num_programs(1) - 1)
    def _():
        num = jnp.sum(num_acc[...], axis=-1, keepdims=True) + smooth   # (1, 1, 1)
        den = jnp.sum(den_acc[...], axis=-1, keepdims=True) + smooth
        loss = 1.0 - num / den
        loss_ref[...] = jnp.broadcast_to(loss, loss_ref.shape)


def binary_dice_loss(predict, target, smooth=1.0, p=2, reduction="mean",
                     vmem_budget_bytes=16 * 1024 * 1024):
    assert predict.shape[0] == target.shape[0], \
        "predict & target batch size don't match"
    n = predict.shape[0]
    pred2d = predict.reshape(n, -1)
    targ2d = target.reshape(n, -1)
    d = pred2d.shape[1]

    # Rows of 128 lanes; pad the row count to a multiple of the sublane width.
    rows = pl.cdiv(d, _LANE)
    rows = pl.cdiv(rows, _SUBLANE) * _SUBLANE

    # Biggest sublane tile (multiple of 8) whose double-buffered f32 working
    # set (2 inputs x 2 buffers x ts x 128 x 4B) stays inside the VMEM budget.
    # 16 MiB budget -> ts up to 8192 rows (~4 MiB per input tile); safe on
    # v5e/v6e (128 MiB VMEM) and v7x (64 MiB per TensorCore).
    bytes_per_row = 2 * 2 * _LANE * 4
    ts_budget = max(_SUBLANE,
                    (vmem_budget_bytes // bytes_per_row) // _SUBLANE * _SUBLANE)
    ts = min(rows, ts_budget)

    # Pad D so the row count divides evenly into tiles. Zero padding is exact
    # (adds 0 to both numerator and denominator).
    rows = pl.cdiv(rows, ts) * ts
    d_pad = rows * _LANE
    if d_pad != d:
        pad = d_pad - d
        pred2d = jnp.pad(pred2d, ((0, 0), (0, pad)))
        targ2d = jnp.pad(targ2d, ((0, 0), (0, pad)))
    pred3d = pred2d.reshape(n, rows, _LANE)
    targ3d = targ2d.reshape(n, rows, _LANE)

    grid = (n, rows // ts)
    kernel = functools.partial(_dice_kernel, smooth=float(smooth), p_exp=p)

    per_batch = pl.pallas_call(
        kernel,
        out_shape=jax.ShapeDtypeStruct((n, 1, _LANE), jnp.float32),
        grid_spec=pltpu.PrefetchScalarGridSpec(
            num_scalar_prefetch=0,
            grid=grid,
            in_specs=[
                pl.BlockSpec((1, ts, _LANE), lambda i, k: (i, k, 0)),
                pl.BlockSpec((1, ts, _LANE), lambda i, k: (i, k, 0)),
            ],
            out_specs=pl.BlockSpec((1, 1, _LANE), lambda i, k: (i, 0, 0)),
            scratch_shapes=[
                pltpu.VMEM((1, 1, _LANE), jnp.float32),
                pltpu.VMEM((1, 1, _LANE), jnp.float32),
            ],
        ),
        compiler_params=pltpu.CompilerParams(
            dimension_semantics=("parallel", "arbitrary"),
            vmem_limit_bytes=32 * 1024 * 1024,
        ),
    )(pred3d, targ3d)

    loss = per_batch[:, 0, 0]
    if reduction == "mean":
        return jnp.mean(loss)
    elif reduction == "sum":
        return jnp.sum(loss)
    elif reduction == "none":
        return loss
    else:
        raise Exception("Unexpected reduction {}".format(reduction))


def _reference(predict, target, smooth=1.0, p=2, reduction="mean"):
    n = predict.shape[0]
    pr = predict.reshape(n, -1).astype(jnp.float32)
    tg = target.reshape(n, -1).astype(jnp.float32)
    num = jnp.sum(pr * tg, axis=1) + smooth
    den = jnp.sum(pr ** p + tg ** p, axis=1) + smooth
    loss = 1.0 - num / den
    if reduction == "mean":
        return loss.mean()
    elif reduction == "sum":
        return loss.sum()
    return loss


if __name__ == "__main__":
    key = jax.random.PRNGKey(0)
    k1, k2, k3, k4 = jax.random.split(key, 4)

    # NCHW inputs: sigmoid probabilities vs binary masks.
    n, c, h, w = 2, 4, 16, 16
    predict = jax.nn.sigmoid(jax.random.normal(k1, (n, c, h, w), jnp.float32))
    target = (jax.random.uniform(k2, (n, c, h, w)) > 0.5).astype(jnp.float32)

    out = binary_dice_loss(predict, target, smooth=1.0, p=2, reduction="mean")
    out = jax.block_until_ready(out)
    ref = _reference(predict, target, smooth=1.0, p=2, reduction="mean")
    assert jnp.allclose(out, ref, atol=1e-5, rtol=1e-5), (out, ref)

    # Ragged D (exercises the zero-padding path) + 'none' reduction.
    n2, c2, h2, w2 = 2, 3, 7, 11
    pr2 = jax.nn.sigmoid(jax.random.normal(k3, (n2, c2, h2, w2), jnp.float32))
    tg2 = (jax.random.uniform(k4, (n2, c2, h2, w2)) > 0.5).astype(jnp.float32)
    out2 = jax.block_until_ready(
        binary_dice_loss(pr2, tg2, smooth=1.0, p=2, reduction="none"))
    ref2 = _reference(pr2, tg2, smooth=1.0, p=2, reduction="none")
    assert jnp.allclose(out2, ref2, atol=1e-5, rtol=1e-5), (out2, ref2)

    print("KERNEL_OK")
</pallas_src>

<mosaic_0001>
module attributes {stable_mosaic.version = 11 : i64} {
  func.func @_dice_kernel(%arg0: i32, %arg1: i32, %arg2: memref<1x8x128xf32, #tpu.memory_space<vmem>>, %arg3: memref<1x8x128xf32, #tpu.memory_space<vmem>>, %arg4: memref<1x1x128xf32, #tpu.memory_space<vmem>>, %arg5: memref<1x1x128xf32, #tpu.memory_space<vmem>>, %arg6: memref<1x1x128xf32, #tpu.memory_space<vmem>>) attributes {dimension_semantics = [#tpu.dimension_semantics<parallel>, #tpu.dimension_semantics<arbitrary>], iteration_bounds = array<i64: 2, 1>, scalar_prefetch = 0 : i64, scratch_operands = 2 : i64, tpu.core_type = #tpu.core_type<tc>, window_params = [{transform_indices = @transform_0, window_bounds = array<i64: 1, 8, 128>}, {transform_indices = @transform_1, window_bounds = array<i64: 1, 8, 128>}, {transform_indices = @transform_2, window_bounds = array<i64: 1, 1, 128>}]} {
    %c0_i32 = arith.constant 0 : i32
    %0 = arith.cmpi eq, %arg1, %c0_i32 : i32
    %1 = arith.extui %0 : i1 to i32
    %c0_i32_0 = arith.constant 0 : i32
    %2 = arith.cmpi ne, %1, %c0_i32_0 : i32
    scf.if %2 {
      %cst_21 = arith.constant 0.000000e+00 : f32
      %22 = vector.broadcast %cst_21 : f32 to vector<1x1x128xf32>
      %c0_22 = arith.constant 0 : index
      %c0_23 = arith.constant 0 : index
      %c0_24 = arith.constant 0 : index
      %23 = vector.load %arg5[%c0_22, %c0_23, %c0_24] : memref<1x1x128xf32, #tpu.memory_space<vmem>>, vector<1x1x128xf32>
      tpu.vector_store %arg5[%c0_22, %c0_23, %c0_24], %22 {strides = array<i32>} : memref<1x1x128xf32, #tpu.memory_space<vmem>>, vector<1x1x128xf32>,
      %cst_25 = arith.constant 0.000000e+00 : f32
      %24 = vector.broadcast %cst_25 : f32 to vector<1x1x128xf32>
      %c0_26 = arith.constant 0 : index
      %c0_27 = arith.constant 0 : index
      %c0_28 = arith.constant 0 : index
      %25 = vector.load %arg6[%c0_26, %c0_27, %c0_28] : memref<1x1x128xf32, #tpu.memory_space<vmem>>, vector<1x1x128xf32>
      tpu.vector_store %arg6[%c0_26, %c0_27, %c0_28], %24 {strides = array<i32>} : memref<1x1x128xf32, #tpu.memory_space<vmem>>, vector<1x1x128xf32>,
    } else {
    }
    %c0 = arith.constant 0 : index
    %c0_1 = arith.constant 0 : index
    %c0_2 = arith.constant 0 : index
    %3 = vector.load %arg2[%c0, %c0_1, %c0_2] : memref<1x8x128xf32, #tpu.memory_space<vmem>>, vector<1x8x128xf32>
    %c0_3 = arith.constant 0 : index
    %c0_4 = arith.constant 0 : index
    %c0_5 = arith.constant 0 : index
    %4 = vector.load %arg3[%c0_3, %c0_4, %c0_5] : memref<1x8x128xf32, #tpu.memory_space<vmem>>, vector<1x8x128xf32>
    %5 = arith.mulf %3, %3 : vector<1x8x128xf32>
    %6 = arith.mulf %4, %4 : vector<1x8x128xf32>
    %7 = arith.addf %5, %6 : vector<1x8x128xf32>
    %c0_6 = arith.constant 0 : index
    %c0_7 = arith.constant 0 : index
    %c0_8 = arith.constant 0 : index
    %8 = vector.load %arg5[%c0_6, %c0_7, %c0_8] : memref<1x1x128xf32, #tpu.memory_space<vmem>>, vector<1x1x128xf32>
    %9 = arith.mulf %3, %4 : vector<1x8x128xf32>
    %cst = arith.constant dense<0.000000e+00> : vector<1x128xf32>
    %10 = vector.multi_reduction <add>, %9, %cst [1] : vector<1x8x128xf32> to vector<1x128xf32>
    %11 = vector.shape_cast %10 : vector<1x128xf32> to vector<1x1x128xf32>
    %12 = arith.addf %8, %11 : vector<1x1x128xf32>
    %c0_9 = arith.constant 0 : index
    %c0_10 = arith.constant 0 : index
    %c0_11 = arith.constant 0 : index
    %13 = vector.load %arg5[%c0_9, %c0_10, %c0_11] : memref<1x1x128xf32, #tpu.memory_space<vmem>>, vector<1x1x128xf32>
    tpu.vector_store %arg5[%c0_9, %c0_10, %c0_11], %12 {strides = array<i32>} : memref<1x1x128xf32, #tpu.memory_space<vmem>>, vector<1x1x128xf32>,
    %c0_12 = arith.constant 0 : index
    %c0_13 = arith.constant 0 : index
    %c0_14 = arith.constant 0 : index
    %14 = vector.load %arg6[%c0_12, %c0_13, %c0_14] : memref<1x1x128xf32, #tpu.memory_space<vmem>>, vector<1x1x128xf32>
    %cst_15 = arith.constant dense<0.000000e+00> : vector<1x128xf32>
    %15 = vector.multi_reduction <add>, %7, %cst_15 [1] : vector<1x8x128xf32> to vector<1x128xf32>
    %16 = vector.shape_cast %15 : vector<1x128xf32> to vector<1x1x128xf32>
    %17 = arith.addf %14, %16 : vector<1x1x128xf32>
    %c0_16 = arith.constant 0 : index
    %c0_17 = arith.constant 0 : index
    %c0_18 = arith.constant 0 : index
    %18 = vector.load %arg6[%c0_16, %c0_17, %c0_18] : memref<1x1x128xf32, #tpu.memory_space<vmem>>, vector<1x1x128xf32>
    tpu.vector_store %arg6[%c0_16, %c0_17, %c0_18], %17 {strides = array<i32>} : memref<1x1x128xf32, #tpu.memory_space<vmem>>, vector<1x1x128xf32>,
    %c0_i32_19 = arith.constant 0 : i32
    %19 = arith.cmpi eq, %arg1, %c0_i32_19 : i32
    %20 = arith.extui %19 : i1 to i32
    %c0_i32_20 = arith.constant 0 : i32
    %21 = arith.cmpi ne, %20, %c0_i32_20 : i32
    scf.if %21 {
      %c0_21 = arith.constant 0 : index
      %c0_22 = arith.constant 0 : index
      %c0_23 = arith.constant 0 : index
      %22 = vector.load %arg5[%c0_21, %c0_22, %c0_23] : memref<1x1x128xf32, #tpu.memory_space<vmem>>, vector<1x1x128xf32>
      %cst_24 = arith.constant dense<0.000000e+00> : vector<1x1xf32>
      %23 = vector.multi_reduction <add>, %22, %cst_24 [2] : vector<1x1x128xf32> to vector<1x1xf32>
      %24 = vector.shape_cast %23 : vector<1x1xf32> to vector<1x1x1xf32>
      %cst_25 = arith.constant 1.000000e+00 : f32
      %25 = vector.broadcast %cst_25 : f32 to vector<1x1x1xf32>
      %26 = arith.addf %24, %25 : vector<1x1x1xf32>
      %c0_26 = arith.constant 0 : index
      %c0_27 = arith.constant 0 : index
      %c0_28 = arith.constant 0 : index
      %27 = vector.load %arg6[%c0_26, %c0_27, %c0_28] : memref<1x1x128xf32, #tpu.memory_space<vmem>>, vector<1x1x128xf32>
      %cst_29 = arith.constant dense<0.000000e+00> : vector<1x1xf32>
      %28 = vector.multi_reduction <add>, %27, %cst_29 [2] : vector<1x1x128xf32> to vector<1x1xf32>
      %29 = vector.shape_cast %28 : vector<1x1xf32> to vector<1x1x1xf32>
      %cst_30 = arith.constant 1.000000e+00 : f32
      %30 = vector.broadcast %cst_30 : f32 to vector<1x1x1xf32>
      %31 = arith.addf %29, %30 : vector<1x1x1xf32>
      %32 = arith.divf %26, %31 : vector<1x1x1xf32>
      %cst_31 = arith.constant 1.000000e+00 : f32
      %33 = vector.broadcast %cst_31 : f32 to vector<1x1x1xf32>
      %34 = arith.subf %33, %32 : vector<1x1x1xf32>
      %35 = vector.shape_cast %34 : vector<1x1x1xf32> to vector<1x1x1xf32>
      %36 = vector.broadcast %35 : vector<1x1x1xf32> to vector<1x1x128xf32>
      %c0_32 = arith.constant 0 : index
      %c0_33 = arith.constant 0 : index
      %c0_34 = arith.constant 0 : index
      %37 = vector.load %arg4[%c0_32, %c0_33, %c0_34] : memref<1x1x128xf32, #tpu.memory_space<vmem>>, vector<1x1x128xf32>
      tpu.vector_store %arg4[%c0_32, %c0_33, %c0_34], %36 {strides = array<i32>} : memref<1x1x128xf32, #tpu.memory_space<vmem>>, vector<1x1x128xf32>,
    } else {
    }
    return
  }
  func.func @transform_0(%arg0: i32, %arg1: i32) -> (i32, i32, i32) {
    %c0_i32 = arith.constant 0 : i32
    %c0_i32_0 = arith.constant 0 : i32
    return %arg0, %arg1, %c0_i32 : i32, i32, i32
  }
  func.func @transform_1(%arg0: i32, %arg1: i32) -> (i32, i32, i32) {
    %c0_i32 = arith.constant 0 : i32
    %c0_i32_0 = arith.constant 0 : i32
    return %arg0, %arg1, %c0_i32 : i32, i32, i32
  }
  func.func @transform_2(%arg0: i32, %arg1: i32) -> (i32, i32, i32) {
    %c0_i32 = arith.constant 0 : i32
    %c0_i32_0 = arith.constant 0 : i32
    %c0_i32_1 = arith.constant 0 : i32
    return %arg0, %c0_i32, %c0_i32_0 : i32, i32, i32
  }
}

</mosaic_0001>

<bundles_post_ra>
// kernel: tpu_custom_call.1
= control target key start
LH: loop header
LB: loop body
LE: loop exit
PB: predicated region body
PF: predicated region fallthrough
CT: control target
= control target key end

     0   :  { %7 = vsyncpa [#allocation5], 0  ;;  %s780_s0 = inlined_call_operand.hbm [shape: f32[2,8,128], index: 0, kind: input, shape index: {}]   ;;  %s781_s1 = inlined_call_operand.hbm [shape: f32[2,8,128], index: 1, kind: input, shape index: {}]   ;;  %s782_s2 = inlined_call_operand.hbm [shape: f32[2,1,128], index: 2, kind: output, shape index: {}]  }
   0x1   :  { %9 = vsyncpa [#allocation5 + $0x1], 0 }
   0x2   :  { %10 = vsyncpa [#allocation8], 0 }
   0x3   :  { %12 = vsyncpa [#allocation8 + $0x1], 0 }
   0x4   :  { %13 = vsyncpa [#allocation6], 0 }
   0x5   :  { %15 = vsyncpa [#allocation6 + $0x1], 0  ;;  %s618_s9 = smov 0   ;;  %s620_s10 = smov 0  }
   0x6   :  { %s622_s11 = smov 0   ;;  %s624_s12 = smov 0  }
   0x7   :  { %s626_s13 = smov 0   ;;  %s628_s14 = smov 0  }
   0x8 LB: > { %s373_s15 = sadd.s32 4294967295, %s597_s14   ;;  %s374_s16 = sadd.s32 4294967294, %s597_s14   ;;  %s597_s14 = sphi %s628_s14, %s21_s14   ;;  %s593_s13 = sphi %s626_s13, %s794_s13   ;;  %s589_s12 = sphi %s624_s12, %s793_s12   ;;  %s585_s11 = sphi %s622_s11, %s792_s11   ;;  %s581_s10 = sphi %s620_s10, %s791_s10   ;;  %s577_s9 = sphi %s618_s9, %s790_s9  }
   0x9   : > { %s33_s17 = sadd.s32 1, %s593_s13  ;;  %s42_s18 = sadd.s32 1, %s585_s11 }
   0xa   : > { %p35_p0 = scmp.ge.s32.totalorder %s33_s17, 2  ;;  %p49_p1 = scmp.ne.s32.totalorder %s585_s11, %s581_s10 }
   0xb   : > { %p50_p2 = scmp.eq.s32.totalorder %s597_s14, 0  ;;  %p55_p3 = scmp.ne.s32.totalorder %s581_s10, %s577_s9 }
   0xc   : > { %s796_s17 = smov (%p35_p0, %s33_s17), 0  ;;  %p56_p5 = scmp.eq.s32.totalorder %s373_s15, 0 }
   0xd   : > { %p659_p4 = por %p50_p2, %p49_p1  ;;  %s37_s20 = ssub.s32 %s593_s13, %s796_s17 }
   0xe   : > { %p107_p6 = scmp.eq.s32.totalorder %s373_s15, 1  ;;  %p40_p7 = scmp.eq.s32.totalorder %s37_s20, 0 }
   0xf   : > { %p665_p8 = por %p56_p5, %p55_p3  ;;  %p113_p10 = scmp.eq.s32.totalorder %s374_s16, 1 }
  0x10   : > { %p669_p9 = por %p107_p6, %p49_p1  ;;  %p404_p13 = scmp.lt.s32.totalorder %s597_s14, 2 }
  0x11   : > { %s674_s23 = scalar_select %p40_p7, %s585_s11, %s42_s18  }
  0x12   : > { %p676_p11 = por %p113_p10, %p55_p3  ;;  %s683_s25 = sand.u32 1, %s585_s11  }
  0x13   : > { %s377_s26 = sshll.u32 %s683_s25, 3  ;;  %s378_s27 = sshll.u32 %s593_s13, 7 }
  0x14   : > { %s143_s30 = scalar_lea.hbm %s780_s0, %s378_s27  ;;  %s137_s3 = scalar_lea.vmem [#allocation4], %s377_s26 }
  0x15   : > { %s145_s4 = sshll.u32 %s137_s3, 4  ;;  %p692_p0 = pnand %p404_p13, %p659_p4  ;;  %s146_s4 = int_to_ptr.vmem [resolvable:$true] %s145_s4 }
  0x16   : > { %p381_p1 = scmp.ge.s32.totalorder %s597_s14, 1  ;;  %p169_p2 = scmp.lt.s32.totalorder %s597_s14, 3 }
  0x17   : > { %s134_s6 = scalar_lea.sflag [#allocation5], %s683_s25  ;;  %p459_p3 = pneg %p692_p0 }
  0x18   : > { %s470_s7 = scalar_lea.vmem %s146_s4, 128  ;;  %s599_s8 = smov [#allocation4]  }
  0x19   : > { %p471_p5 = scmp.ne.s32.totalorder %s146_s4, %s470_s7  ;;  %s475_s15 = sshll.u32 %s599_s8, 4  ;;  %s476_s15 = int_to_ptr.vmem [resolvable:$false] %s475_s15 }
  0x1a   : > { %s477_s16 = scalar_lea.vmem %s476_s15, 256  ;;  %p478_p4 = scmp.lt.s32.totalorder %s146_s4, %s476_s15 }
  0x1b   : > { %p473_p6 = pnand %p471_p5, %p459_p3  ;;  %p479_p10 = scmp.lt.s32.totalorder %s477_s16, %s470_s7 }
  0x1d   : > { %p474_p7 = pneg %p473_p6  ;;  %p480_p13 = por %p479_p10, %p478_p4 }
  0x1f   : > { %p481_p12 = pnand %p480_p13, %p474_p7 }
  0x21   : > { %484 = shalt.err (!%p481_p12)
}
  0x22   : > { %396 = dma.hbm_to_vmem [thread:$0]  (!%p692_p0), %s143_s30, 128, %s146_s4, %s134_s6  }
  0x23   : > { %p710_p5 = pnand %p381_p1, %p169_p2  ;;  %s162_s28 = scalar_lea.hbm %s781_s1, %s378_s27 }
  0x24   : > { %s156_s29 = scalar_lea.vmem [#allocation7], %s377_s26  ;;  %s153_s7 = scalar_lea.sflag [#allocation8], %s683_s25 }
  0x25   : > { %s164_s3 = sshll.u32 %s156_s29, 4  ;;  %s600_s30 = smov [#allocation7]   ;;  %s165_s3 = int_to_ptr.vmem [resolvable:$true] %s164_s3 }
  0x26   : > { %s498_s8 = scalar_lea.vmem %s165_s3, 128  ;;  %s503_s4 = sshll.u32 %s600_s30, 4  ;;  %s504_s4 = int_to_ptr.vmem [resolvable:$false] %s503_s4 }
  0x27   : > { %p499_p12 = scmp.ne.s32.totalorder %s165_s3, %s498_s8  ;;  %s505_s6 = scalar_lea.vmem %s504_s4, 256 }
  0x28   : > { %p506_p1 = scmp.lt.s32.totalorder %s165_s3, %s504_s4  ;;  %p507_p2 = scmp.lt.s32.totalorder %s505_s6, %s498_s8 }
  0x29   : > { %p501_p6 = pnand %p499_p12, %p459_p3 }
  0x2a   : > { %p508_p4 = por %p507_p2, %p506_p1 }
  0x2b   : > { %p502_p7 = pneg %p501_p6 }
  0x2d   : > { %p509_p10 = pnand %p508_p4, %p502_p7 }
  0x2f   : > { %512 = shalt.err (!%p509_p10)
}
  0x30   : > { %399 = dma.hbm_to_vmem [thread:$0]  (!%p692_p0), %s162_s28, 128, %s165_s3, %s153_s7  }
  0x31   : > { %173 = sbr.rel (%p710_p5) target bundleno = 256 (0x100), region = 28  ;;  %s726_s25 = sand.u32 (!%p710_p5), 1, %s581_s10  }
  0x32   : > { %s382_s26 = sshll.u32 (!%p710_p5), %s726_s25, 3  ;;  %s176_s27 = scalar_lea.sflag (!%p710_p5), [#allocation5], %s726_s25 }
  0x33   : > { %s179_s15 = scalar_lea.vmem (!%p710_p5), [#allocation4], %s382_s26 }
  0x36   : > { %564 = dma.done.wait (%p665_p8), %s176_s27, 128  }
  0x37   : > { %566 = vsyncadd (%p665_p8), %s176_s27, 4294967168  ;;  %s185_s5 = scalar_lea.sflag [#allocation8], %s726_s25  ;;  %s188_s16 = scalar_lea.vmem [#allocation7], %s382_s26 }
  0x38   : > { %568 = dma.done.wait (%p665_p8), %s185_s5, 128  }
  0x39   : > { %570 = vsyncadd (%p665_p8), %s185_s5, 4294967168  ;;  %v601_v0 = vmov 0.0   ;;  %v219_v1 = vld [vmem:[%s179_s15] sm:$0xff]  ;;  %v220_v2 = vld [vmem:[%s188_s16] sm:$0xff]  ;;  %vm247_vm0 = vcmask 1040384   ;;  %s384_s21 = sshll.u32 %s589_s12, 4 }
  0x3a   : > { %217 = vst [vmem:[#allocation2] sm:$0x1] %v601_v0  ;;  %218 = vst [vmem:[#allocation3] sm:$0x1] %v601_v0  ;;  %v221_v3 = vmul.f32 %v219_v1, %v219_v1  ;;  %v222_v4 = vmul.f32 %v220_v2, %v220_v2  ;;  %v225_v5 = vmul.f32 %v220_v2, %v219_v1  ;;  %s212_s18 = scalar_lea.vmem [#allocation9], %s726_s25  ;;  %s272_s29 = scalar_lea.hbm %s782_s2, %s384_s21 }
  0x3b   : > { %s274_s19 = sshll.u32 %s212_s18, 4  ;;  %s262_s3 = scalar_lea.sflag [#allocation6], %s726_s25  ;;  %s275_s19 = int_to_ptr.vmem [resolvable:$true] %s274_s19 }
  0x3c   : > { %v223_v6 = vadd.f32 %v222_v4, %v221_v3  ;;  %v226_v7 = vrot.slane %v225_v5, 4  ;;  %s513_s7 = scalar_lea.vmem %s275_s19, 16  ;;  %s602_s8 = smov [#allocation9]  }
  0x3d   : > { %p514_p8 = scmp.ne.s32.totalorder %s275_s19, %s513_s7  ;;  %s517_s30 = sshll.u32 %s602_s8, 4  ;;  %s518_s30 = int_to_ptr.vmem [resolvable:$false] %s517_s30 }
  0x3e   : > { %v235_v8 = vrot.slane %v223_v6, 4  ;;  %v227_v9 = vadd.f32 %v226_v7, %v225_v5  ;;  %s519_s12 = scalar_lea.vmem %s518_s30, 32  ;;  %p520_p13 = scmp.lt.s32.totalorder %s275_s19, %s518_s30 }
  0x3f   : > { %p515_p0 = pnand %p514_p8, %p669_p9  ;;  %p521_p5 = scmp.lt.s32.totalorder %s519_s12, %s513_s7 }
  0x40   : > { %v236_v10 = vadd.f32 %v235_v8, %v223_v6  ;;  %v228_v11 = vrot.slane %v227_v9, 2 }
  0x41   : > { %v224_v16 = vld [vmem:[#allocation2] sm:$0x1]  ;;  %v234_v19 = vld [vmem:[#allocation3] sm:$0x1]  ;;  %p516_p3 = pneg %p515_p0  ;;  %p522_p12 = por %p521_p5, %p520_p13 }
  0x42   : > { %v237_v12 = vrot.slane %v236_v10, 2  ;;  %v229_v13 = vadd.f32 %v228_v11, %v227_v9 }
  0x43   : > { %p523_p6 = pnand %p522_p12, %p516_p3 }
  0x44   : > { %v238_v14 = vadd.f32 %v237_v12, %v236_v10  ;;  %v230_v15 = vrot.slane %v229_v13, 1 }
  0x46   : > { %v239_v17 = vrot.slane %v238_v14, 1  ;;  %v231_v18 = vadd.f32 %v230_v15, %v229_v13 }
  0x48   : > { %v240_v20 = vadd.f32 %v239_v17, %v238_v14  ;;  %v232_v21 = vadd.f32 %v231_v18, %v224_v16 }
  0x4a   : > { %v241_v22 = vadd.f32 %v240_v20, %v234_v19  ;;  %233 = vst [vmem:[#allocation2] sm:$0x1] %v232_v21 }
  0x4c   : > { %242 = vst [vmem:[#allocation3] sm:$0x1] %v241_v22 }
  0x51   : > { %v246_v24 = vld [vmem:[#allocation2] sm:$0x1] }
  0x52   : > { %v248_v26 = vsel %vm247_vm0, %v246_v24, 0.0 }
  0x53   : > { %v252_v23 = vld [vmem:[#allocation3] sm:$0x1] }
  0x54   : > { %v253_v25 = vsel %vm247_vm0, %v252_v23, 0.0 }
  0x55   : > { %254 = vadd.xlane.f32.xlu0 %v253_v25 }
  0x59   : > { %249 = vadd.xlane.f32.xlu0 %v248_v26 }
  0xde   : > { %v255_v27 = vpop.xlane.xlu0 %254 }
  0xdf   : > { %v256_v28 = vadd.f32 1.0, %v255_v27 }
  0xe1   : > { %455 = vrcp.f32 %v256_v28 }
  0xe2   : > { %v250_v29 = vpop.xlane.xlu0 %249 }
  0xe3   : > { %v251_v30 = vadd.f32 1.0, %v250_v29 }
  0xee   : > { %v456_v31 = vpop.eup %455 }
  0xef   : > { %v258_v32 = vmul.f32 %v456_v31, %v251_v30 }
  0xf1   : > { %v259_v33 = vsub.f32 1.0, %v258_v32 }
  0xf3   : > { %260 = vst [vmem:[%s212_s18] sm:$0x1] %v259_v33 }
  0xf4   : > { %526 = shalt.err (!%p523_p6)
}
  0xf5   : > { %s527_s4 = scalar_lea.hbm %s272_s29, 16  ;;  %s531_s26 = scalar_lea.hbm %s782_s2, 32 }
  0xf6   : > { %p528_p7 = scmp.ne.s32.totalorder %s272_s29, %s527_s4  ;;  %p532_p4 = scmp.lt.s32.totalorder %s272_s29, %s782_s2 }
  0xf7   : > { %p533_p10 = scmp.lt.s32.totalorder %s531_s26, %s527_s4 }
  0xf8   : > { %p529_p1 = pnand %p528_p7, %p669_p9 }
  0xf9   : > { %p534_p8 = por %p533_p10, %p532_p4 }
  0xfa   : > { %p530_p2 = pneg %p529_p1 }
  0xfc   : > { %p535_p0 = pnand %p534_p8, %p530_p2 }
  0xfe   : > { %538 = shalt.err (!%p535_p0)
}
  0xff   : > { %391 = dma.vmem_to_hbm [thread:$0]  (%p669_p9), %s275_s19, 16, %s272_s29, %s262_s3  }
 0x100 PF: > { %s286_s5 = sand.u32 1, %s577_s9   ;;  %p789_p3 = scmp.ge.s32.totalorder %s597_s14, 2 }
 0x101   : > { %s287_s16 = scalar_lea.sflag [#allocation6], %s286_s5 }
 0x102   : > { %p401_p13 = pnand %p789_p3, %p676_p11 }
 0x104   : > { %p402_p5 = pneg %p401_p13 }
 0x106   : > { %572 = dma.done.wait (%p402_p5), %s287_s16, 16  }
 0x107   : > { %574 = vsyncadd (%p402_p5), %s287_s16, 4294967280  ;;  %s21_s14 = sadd.s32 1, %s597_s14   ;;  %s790_s9 = smov %s581_s10 }
 0x108   : > { %p18_p12 = scmp.ge.s32.totalorder %s21_s14, 4   ;;  %s791_s10 = smov %s585_s11 }
 0x109   : > { %s792_s11 = smov %s674_s23  ;;  %s793_s12 = smov %s593_s13 }
 0x10a   : > { %s794_s13 = smov %s796_s17  ;;  %20 = sbr.rel (!%p18_p12) target bundleno = 8 (0x8), region = 94 }
 0x10f   :  { %291 = vsyncpa [#allocation5], 1 }
 0x110   :  { %293 = vsyncpa [#allocation5 + $0x1], 1 }
 0x111   :  { %294 = vsyncpa [#allocation8], 1 }
 0x112   :  { %296 = vsyncpa [#allocation8 + $0x1], 1 }
 0x113   :  { %297 = vsyncpa [#allocation6], 1 }
 0x114   :  { %299 = vsyncpa [#allocation6 + $0x1], 1 }

</bundles_post_ra>
